<compile_context>
chip_gen: v6e
topology: v6e:2x2x1
jax: 0.10.0
libtpu: 0.0.40
codegen_flags: <defaults>
</compile_context>

<pallas_src>
import jax
import jax.numpy as jnp
from jax.experimental import pallas as pl
from jax.experimental.pallas import tpu as pltpu

NUM_HEADS = 4
NEG_SLOPE = 0.2
MASK_VAL = -1e9


def gat_complete_graph_kernel(h_ref, al_ref, ar_ref, bmean_ref,
                              segd_ref, segs_ref, o_ref):
    """One dst-row tile of GATConv (+ fused head-mean) on the block-diagonal
    complete graph.

    h_ref     : (Npad, H*D) mxu dtype  pre-projected features x @ W (all src)
    al_ref    : (H,    H*D) mxu dtype  row h = attn_l[h] in cols [h*D,(h+1)*D)
    ar_ref    : (H,    H*D) mxu dtype  row h = attn_r[h] in cols [h*D,(h+1)*D)
    bmean_ref : (1,    D)   f32        mean-over-heads bias
    segd_ref  : (TQ, 1)     i32        sub-graph id of each dst row of the tile
    segs_ref  : (1, Npad)   i32        sub-graph id of every source node
    o_ref     : (TQ,   D)   f32        head-averaged output rows
    """
    tq, d = o_ref.shape

    h_src = h_ref[...]                                          # (Npad, H*D)
    # Dst rows are a sub-slice of the resident source rows -> no duplicate
    # input stream and no re-projection of the dst tile.
    i0 = pl.multiple_of(pl.program_id(0) * tq, 8)
    h_dst = h_ref[pl.ds(i0, tq), :]                             # (TQ, H*D)

    # Per-head attention logits via two small MXU contractions (f32 acc):
    #   el[h, src] = <h_src[src], attn_l[h]>,  er[dst, h] = <h_dst[dst], attn_r[h]>
    el_src = jnp.einsum('hd,nd->hn', al_ref[...], h_src,
                        preferred_element_type=jnp.float32)     # (H, Npad)
    er_dst = jnp.einsum('nd,hd->nh', h_dst, ar_ref[...],
                        preferred_element_type=jnp.float32)     # (TQ, H)

    # Complete graph inside each sub-graph, built in-kernel from the ids.
    same = segd_ref[...] == segs_ref[...]                       # (TQ, Npad)

    acc = jnp.zeros((tq, d), jnp.float32)
    for hd in range(NUM_HEADS):                                 # static unroll
        # e[dst, src] = leaky_relu(el[src] + er[dst]), same sub-graph only.
        e = er_dst[:, hd:hd + 1] + el_src[hd:hd + 1, :]         # (TQ, Npad) f32
        e = jnp.maximum(e, NEG_SLOPE * e)                       # leaky_relu
        e = jnp.where(same, e, MASK_VAL)

        # edge_softmax; normalization deferred past the aggregation matmul.
        e = e - jnp.max(e, axis=-1, keepdims=True)
        p = jnp.exp(e)                                          # f32 (EUP)
        den = jnp.sum(p, axis=-1, keepdims=True)                # (TQ, 1) f32

        # Aggregation on the MXU; operands in the MXU dtype, f32 accumulation.
        s = jnp.dot(p.astype(h_src.dtype), h_src[:, hd * d:(hd + 1) * d],
                    preferred_element_type=jnp.float32)         # (TQ, D)
        acc = acc + s * pl.reciprocal(den, approx=True)

    # Fused head-mean + head-averaged bias; single (TQ, D) store.
    o_ref[...] = (acc * (1.0 / NUM_HEADS) + bmean_ref[...]).astype(o_ref.dtype)


def _cdiv(a, b):
    return -(-a // b)


def _round_up(a, b):
    return _cdiv(a, b) * b


def completed_sentence_graph_forward(sent_feature, w, attn_l, attn_r, bias,
                                     seg_ids, *, mxu_dtype=jnp.bfloat16):
    """CompletedSentenceGraph.forward: fused GATConv over per-document complete
    graphs + mean over the 4 heads.  seg_ids[i] = sub-graph (document) id of
    sentence i (>= 0; padding uses the sentinel -1 internally)."""
    n, din = sent_feature.shape
    hdt = w.shape[1]                       # H * D
    d = hdt // NUM_HEADS

    # Padding-aware dst tiling: minimise Npad (all (TQ,Npad) work scales with
    # it) and guarantee >=2 tiles once n is big enough so the "parallel" grid
    # axis keeps both v7x TensorCores busy.
    min_tiles = 2 if n > 96 else 1
    ntiles = max(min_tiles, _cdiv(n, 128))
    tq = _round_up(_cdiv(n, ntiles), 8)
    npad = ntiles * tq

    x = jnp.zeros((npad, din), jnp.float32).at[:n].set(
        sent_feature.astype(jnp.float32))
    seg = jnp.full((npad,), -1, jnp.int32).at[:n].set(seg_ids.astype(jnp.int32))

    # Projection h = x @ W done ONCE here (padded rows stay zero) instead of
    # once per dst tile inside the kernel; fed to the kernel in the MXU dtype
    # (bf16 halves the resident h buffer and doubles MXU rate on v6e/v7x).
    h = jnp.dot(x, w.astype(jnp.float32),
                preferred_element_type=jnp.float32).astype(mxu_dtype)

    # Block-structured attention vectors: row h holds a_{l,r}[h] in the head-h
    # column block, zeros elsewhere -> el/er become plain MXU contractions.
    al_mat = jnp.zeros((NUM_HEADS, hdt), jnp.float32)
    ar_mat = jnp.zeros((NUM_HEADS, hdt), jnp.float32)
    for hh in range(NUM_HEADS):
        al_mat = al_mat.at[hh, hh * d:(hh + 1) * d].set(attn_l[hh].astype(jnp.float32))
        ar_mat = ar_mat.at[hh, hh * d:(hh + 1) * d].set(attn_r[hh].astype(jnp.float32))
    al_mat = al_mat.astype(mxu_dtype)
    ar_mat = ar_mat.astype(mxu_dtype)
    # Head-mean is fused in the kernel -> only the head-averaged bias is needed.
    bias_mean = bias.astype(jnp.float32).reshape(NUM_HEADS, d).mean(axis=0)[None, :]

    out_pad = pl.pallas_call(
        gat_complete_graph_kernel,
        out_shape=jax.ShapeDtypeStruct((npad, d), jnp.float32),
        grid=(ntiles,),
        in_specs=[
            pl.BlockSpec((npad, hdt), lambda i: (0, 0)),        # h (all src rows, resident)
            pl.BlockSpec((NUM_HEADS, hdt), lambda i: (0, 0)),   # attn_l (block-structured)
            pl.BlockSpec((NUM_HEADS, hdt), lambda i: (0, 0)),   # attn_r (block-structured)
            pl.BlockSpec((1, d), lambda i: (0, 0)),             # head-mean bias
            pl.BlockSpec((tq, 1), lambda i: (i, 0)),            # seg ids, dst tile
            pl.BlockSpec((1, npad), lambda i: (0, 0)),          # seg ids, all src
        ],
        out_specs=pl.BlockSpec((tq, d), lambda i: (i, 0)),
        compiler_params=pltpu.CompilerParams(
            dimension_semantics=("parallel",)),                  # shards dst tiles across TCs
    )(h, al_mat, ar_mat, bias_mean, seg[:, None], seg[None, :])

    # Drop padded rows; head-mean already applied in-kernel.
    return out_pad[:n]


def reference_forward(sent_feature, w, attn_l, attn_r, bias, seg_ids):
    """Pure-JAX f32 reference of DGL GATConv on the complete per-graph topology."""
    n = sent_feature.shape[0]
    d = w.shape[1] // NUM_HEADS
    h = (sent_feature @ w).reshape(n, NUM_HEADS, d)
    el = jnp.sum(h * attn_l[None], axis=-1)            # (N, H) src
    er = jnp.sum(h * attn_r[None], axis=-1)            # (N, H) dst
    e = el[None, :, :] + er[:, None, :]                # e[dst, src, head]
    e = jnp.where(e > 0, e, NEG_SLOPE * e)
    same = seg_ids[:, None] == seg_ids[None, :]
    e = jnp.where(same[:, :, None], e, MASK_VAL)
    a = jax.nn.softmax(e, axis=1)                      # over src
    out = jnp.einsum('jih,ihd->jhd', a, h) + bias[None]
    return out.mean(axis=1)


if __name__ == "__main__":
    HIDDEN = 32            # hps.hidden_size
    D_OUT = HIDDEN         # GATConv out_feats == hidden_size

    key = jax.random.PRNGKey(0)
    k_x, k_w, k_al, k_ar, k_b, k_x2 = jax.random.split(key, 6)

    # Synthetic GATConv parameters (DGL shapes):
    #   fc.weight: (H*D, Din) -> stored transposed as (Din, H*D)
    #   attn_l / attn_r: (1, H, D) -> stored as (H, D);  bias: (H*D,) -> (H, D)
    w = 0.1 * jax.random.normal(k_w, (HIDDEN, NUM_HEADS * D_OUT), dtype=jnp.float32)
    attn_l = 0.1 * jax.random.normal(k_al, (NUM_HEADS, D_OUT), dtype=jnp.float32)
    attn_r = 0.1 * jax.random.normal(k_ar, (NUM_HEADS, D_OUT), dtype=jnp.float32)
    bias = 0.1 * jax.random.normal(k_b, (NUM_HEADS, D_OUT), dtype=jnp.float32)

    # Case 1: two documents with 4 sentences each -> 8 sentence nodes (grid=(1,)).
    seg1 = jnp.array([0, 0, 0, 0, 1, 1, 1, 1], dtype=jnp.int32)
    x1 = jax.random.normal(k_x, (seg1.shape[0], HIDDEN), dtype=jnp.float32)
    # Case 2: tiled multi-program path + padding
    # (8 documents x 25 sentences -> 200 nodes, padded to 208, grid=(2,)).
    seg2 = jnp.repeat(jnp.arange(8, dtype=jnp.int32), 25)
    x2 = jax.random.normal(k_x2, (seg2.shape[0], HIDDEN), dtype=jnp.float32)

    for xf, seg in ((x1, seg1), (x2, seg2)):
        ref = reference_forward(xf, w, attn_l, attn_r, bias, seg)

        # f32-at-MXU path: tight parity with the f32 reference.
        out_f32 = jax.block_until_ready(
            completed_sentence_graph_forward(xf, w, attn_l, attn_r, bias, seg,
                                             mxu_dtype=jnp.float32))
        assert out_f32.shape == (xf.shape[0], D_OUT)
        assert jnp.allclose(out_f32, ref, atol=2e-3, rtol=2e-3), "f32 mismatch vs reference"

        # Default bf16-at-MXU path (f32 accumulation + f32 softmax): looser
        # tolerance absorbs the deliberate bf16 operand rounding.
        out_bf = jax.block_until_ready(
            completed_sentence_graph_forward(xf, w, attn_l, attn_r, bias, seg))
        assert out_bf.shape == (xf.shape[0], D_OUT)
        assert jnp.allclose(out_bf, ref, atol=1e-2, rtol=1e-2), "bf16 mismatch vs reference"

    print("KERNEL_OK")
</pallas_src>

<mosaic_0001>
module attributes {stable_mosaic.version = 11 : i64} {
  func.func @gat_complete_graph_kernel(%arg0: i32, %arg1: memref<8x128xf32, #tpu.memory_space<vmem>>, %arg2: memref<4x128xf32, #tpu.memory_space<vmem>>, %arg3: memref<4x128xf32, #tpu.memory_space<vmem>>, %arg4: memref<1x32xf32, #tpu.memory_space<vmem>>, %arg5: memref<8x1xi32, #tpu.memory_space<vmem>>, %arg6: memref<1x8xi32, #tpu.memory_space<vmem>>, %arg7: memref<8x32xf32, #tpu.memory_space<vmem>>) attributes {dimension_semantics = [#tpu.dimension_semantics<parallel>], iteration_bounds = array<i64: 1>, scalar_prefetch = 0 : i64, scratch_operands = 0 : i64, tpu.core_type = #tpu.core_type<tc>, window_params = [{pipeline_mode = #tpu.pipeline_mode<synchronous>, transform_indices = @transform_0, window_bounds = array<i64: 8, 128>}, {pipeline_mode = #tpu.pipeline_mode<synchronous>, transform_indices = @transform_1, window_bounds = array<i64: 4, 128>}, {pipeline_mode = #tpu.pipeline_mode<synchronous>, transform_indices = @transform_2, window_bounds = array<i64: 4, 128>}, {pipeline_mode = #tpu.pipeline_mode<synchronous>, transform_indices = @transform_3, window_bounds = array<i64: 1, 32>}, {transform_indices = @transform_4, window_bounds = array<i64: 8, 1>}, {pipeline_mode = #tpu.pipeline_mode<synchronous>, transform_indices = @transform_5, window_bounds = array<i64: 1, 8>}, {transform_indices = @transform_6, window_bounds = array<i64: 8, 32>}]} {
    %c0 = arith.constant 0 : index
    %c0_0 = arith.constant 0 : index
    %0 = vector.load %arg1[%c0, %c0_0] : memref<8x128xf32, #tpu.memory_space<vmem>>, vector<8x128xf32>
    %c8_i32 = arith.constant 8 : i32
    %1 = arith.muli %arg0, %c8_i32 : i32
    %2 = tpu.assume_multiple %1, 8 : i32
    %3 = arith.index_cast %2 : i32 to index
    %c0_1 = arith.constant 0 : index
    %4 = vector.load %arg1[%3, %c0_1] : memref<8x128xf32, #tpu.memory_space<vmem>>, vector<8x128xf32>
    %c0_2 = arith.constant 0 : index
    %c0_3 = arith.constant 0 : index
    %5 = vector.load %arg2[%c0_2, %c0_3] : memref<4x128xf32, #tpu.memory_space<vmem>>, vector<4x128xf32>
    "tpu.trace_start"() <{level = 10 : i32, message = "hd,nd->hn"}> : () -> ()
    %cst = arith.constant dense<0.000000e+00> : vector<4x8xf32>
    %6 = tpu.matmul %5, %0, %cst {dimension_numbers = #tpu.dot_dimension_numbers<[1], [1], [0], [0], [0, 0, 1, 0], [], []>} : vector<4x128xf32>, vector<8x128xf32>, vector<4x8xf32> -> vector<4x8xf32>
    "tpu.trace_stop"() : () -> ()
    %c0_4 = arith.constant 0 : index
    %c0_5 = arith.constant 0 : index
    %7 = vector.load %arg3[%c0_4, %c0_5] : memref<4x128xf32, #tpu.memory_space<vmem>>, vector<4x128xf32>
    "tpu.trace_start"() <{level = 10 : i32, message = "nd,hd->nh"}> : () -> ()
    %cst_6 = arith.constant dense<0.000000e+00> : vector<8x4xf32>
    %8 = tpu.matmul %4, %7, %cst_6 {dimension_numbers = #tpu.dot_dimension_numbers<[1], [1], [0], [0], [0, 0, 1, 0], [], []>} : vector<8x128xf32>, vector<4x128xf32>, vector<8x4xf32> -> vector<8x4xf32>
    "tpu.trace_stop"() : () -> ()
    %c0_7 = arith.constant 0 : index
    %c0_8 = arith.constant 0 : index
    %9 = vector.load %arg5[%c0_7, %c0_8] : memref<8x1xi32, #tpu.memory_space<vmem>>, vector<8x1xi32>
    %c0_9 = arith.constant 0 : index
    %c0_10 = arith.constant 0 : index
    %10 = vector.load %arg6[%c0_9, %c0_10] : memref<1x8xi32, #tpu.memory_space<vmem>>, vector<1x8xi32>
    %11 = vector.broadcast %9 : vector<8x1xi32> to vector<8x8xi32>
    %12 = vector.broadcast %10 : vector<1x8xi32> to vector<8x8xi32>
    %13 = arith.cmpi eq, %11, %12 : vector<8x8xi32>
    %cst_11 = arith.constant 0.000000e+00 : f32
    %14 = vector.broadcast %cst_11 : f32 to vector<8x32xf32>
    %15 = vector.extract_strided_slice %8 {offsets = [0, 0], sizes = [8, 1], strides = [1, 1]} : vector<8x4xf32> to vector<8x1xf32>
    %16 = vector.extract_strided_slice %6 {offsets = [0, 0], sizes = [1, 8], strides = [1, 1]} : vector<4x8xf32> to vector<1x8xf32>
    %17 = vector.broadcast %15 : vector<8x1xf32> to vector<8x8xf32>
    %18 = vector.broadcast %16 : vector<1x8xf32> to vector<8x8xf32>
    %19 = arith.addf %17, %18 : vector<8x8xf32>
    %cst_12 = arith.constant 2.000000e-01 : f32
    %20 = vector.broadcast %cst_12 : f32 to vector<8x8xf32>
    %21 = arith.mulf %20, %19 : vector<8x8xf32>
    %22 = arith.maximumf %19, %21 : vector<8x8xf32>
    %cst_13 = arith.constant -1.000000e+09 : f32
    %23 = vector.broadcast %cst_13 : f32 to vector<8x8xf32>
    %24 = arith.select %13, %22, %23 : vector<8x8xi1>, vector<8x8xf32>
    %cst_14 = arith.constant dense<0xFF800000> : vector<8xf32>
    %25 = vector.multi_reduction <maximumf>, %24, %cst_14 [1] : vector<8x8xf32> to vector<8xf32>
    %26 = vector.shape_cast %25 : vector<8xf32> to vector<8x1xf32>
    %27 = vector.broadcast %26 : vector<8x1xf32> to vector<8x8xf32>
    %28 = arith.subf %24, %27 : vector<8x8xf32>
    %29 = math.exp %28 : vector<8x8xf32>
    %cst_15 = arith.constant dense<0.000000e+00> : vector<8xf32>
    %30 = vector.multi_reduction <add>, %29, %cst_15 [1] : vector<8x8xf32> to vector<8xf32>
    %31 = vector.shape_cast %30 : vector<8xf32> to vector<8x1xf32>
    %32 = vector.extract_strided_slice %0 {offsets = [0, 0], sizes = [8, 32], strides = [1, 1]} : vector<8x128xf32> to vector<8x32xf32>
    %cst_16 = arith.constant dense<0.000000e+00> : vector<8x32xf32>
    %33 = tpu.matmul %29, %32, %cst_16 {dimension_numbers = #tpu.dot_dimension_numbers<[1], [0], [0], [1], [0, 0, 1, 1], [], []>} : vector<8x8xf32>, vector<8x32xf32>, vector<8x32xf32> -> vector<8x32xf32>
    %34 = tpu.reciprocal %31 {approx = true} : vector<8x1xf32> -> vector<8x1xf32>
    %35 = vector.broadcast %34 : vector<8x1xf32> to vector<8x32xf32>
    %36 = arith.mulf %33, %35 : vector<8x32xf32>
    %37 = arith.addf %14, %36 : vector<8x32xf32>
    %38 = vector.extract_strided_slice %8 {offsets = [0, 1], sizes = [8, 1], strides = [1, 1]} : vector<8x4xf32> to vector<8x1xf32>
    %39 = vector.extract_strided_slice %6 {offsets = [1, 0], sizes = [1, 8], strides = [1, 1]} : vector<4x8xf32> to vector<1x8xf32>
    %40 = vector.broadcast %38 : vector<8x1xf32> to vector<8x8xf32>
    %41 = vector.broadcast %39 : vector<1x8xf32> to vector<8x8xf32>
    %42 = arith.addf %40, %41 : vector<8x8xf32>
    %cst_17 = arith.constant 2.000000e-01 : f32
    %43 = vector.broadcast %cst_17 : f32 to vector<8x8xf32>
    %44 = arith.mulf %43, %42 : vector<8x8xf32>
    %45 = arith.maximumf %42, %44 : vector<8x8xf32>
    %cst_18 = arith.constant -1.000000e+09 : f32
    %46 = vector.broadcast %cst_18 : f32 to vector<8x8xf32>
    %47 = arith.select %13, %45, %46 : vector<8x8xi1>, vector<8x8xf32>
    %cst_19 = arith.constant dense<0xFF800000> : vector<8xf32>
    %48 = vector.multi_reduction <maximumf>, %47, %cst_19 [1] : vector<8x8xf32> to vector<8xf32>
    %49 = vector.shape_cast %48 : vector<8xf32> to vector<8x1xf32>
    %50 = vector.broadcast %49 : vector<8x1xf32> to vector<8x8xf32>
    %51 = arith.subf %47, %50 : vector<8x8xf32>
    %52 = math.exp %51 : vector<8x8xf32>
    %cst_20 = arith.constant dense<0.000000e+00> : vector<8xf32>
    %53 = vector.multi_reduction <add>, %52, %cst_20 [1] : vector<8x8xf32> to vector<8xf32>
    %54 = vector.shape_cast %53 : vector<8xf32> to vector<8x1xf32>
    %55 = vector.extract_strided_slice %0 {offsets = [0, 32], sizes = [8, 32], strides = [1, 1]} : vector<8x128xf32> to vector<8x32xf32>
    %cst_21 = arith.constant dense<0.000000e+00> : vector<8x32xf32>
    %56 = tpu.matmul %52, %55, %cst_21 {dimension_numbers = #tpu.dot_dimension_numbers<[1], [0], [0], [1], [0, 0, 1, 1], [], []>} : vector<8x8xf32>, vector<8x32xf32>, vector<8x32xf32> -> vector<8x32xf32>
    %57 = tpu.reciprocal %54 {approx = true} : vector<8x1xf32> -> vector<8x1xf32>
    %58 = vector.broadcast %57 : vector<8x1xf32> to vector<8x32xf32>
    %59 = arith.mulf %56, %58 : vector<8x32xf32>
    %60 = arith.addf %37, %59 : vector<8x32xf32>
    %61 = vector.extract_strided_slice %8 {offsets = [0, 2], sizes = [8, 1], strides = [1, 1]} : vector<8x4xf32> to vector<8x1xf32>
    %62 = vector.extract_strided_slice %6 {offsets = [2, 0], sizes = [1, 8], strides = [1, 1]} : vector<4x8xf32> to vector<1x8xf32>
    %63 = vector.broadcast %61 : vector<8x1xf32> to vector<8x8xf32>
    %64 = vector.broadcast %62 : vector<1x8xf32> to vector<8x8xf32>
    %65 = arith.addf %63, %64 : vector<8x8xf32>
    %cst_22 = arith.constant 2.000000e-01 : f32
    %66 = vector.broadcast %cst_22 : f32 to vector<8x8xf32>
    %67 = arith.mulf %66, %65 : vector<8x8xf32>
    %68 = arith.maximumf %65, %67 : vector<8x8xf32>
    %cst_23 = arith.constant -1.000000e+09 : f32
    %69 = vector.broadcast %cst_23 : f32 to vector<8x8xf32>
    %70 = arith.select %13, %68, %69 : vector<8x8xi1>, vector<8x8xf32>
    %cst_24 = arith.constant dense<0xFF800000> : vector<8xf32>
    %71 = vector.multi_reduction <maximumf>, %70, %cst_24 [1] : vector<8x8xf32> to vector<8xf32>
    %72 = vector.shape_cast %71 : vector<8xf32> to vector<8x1xf32>
    %73 = vector.broadcast %72 : vector<8x1xf32> to vector<8x8xf32>
    %74 = arith.subf %70, %73 : vector<8x8xf32>
    %75 = math.exp %74 : vector<8x8xf32>
    %cst_25 = arith.constant dense<0.000000e+00> : vector<8xf32>
    %76 = vector.multi_reduction <add>, %75, %cst_25 [1] : vector<8x8xf32> to vector<8xf32>
    %77 = vector.shape_cast %76 : vector<8xf32> to vector<8x1xf32>
    %78 = vector.extract_strided_slice %0 {offsets = [0, 64], sizes = [8, 32], strides = [1, 1]} : vector<8x128xf32> to vector<8x32xf32>
    %cst_26 = arith.constant dense<0.000000e+00> : vector<8x32xf32>
    %79 = tpu.matmul %75, %78, %cst_26 {dimension_numbers = #tpu.dot_dimension_numbers<[1], [0], [0], [1], [0, 0, 1, 1], [], []>} : vector<8x8xf32>, vector<8x32xf32>, vector<8x32xf32> -> vector<8x32xf32>
    %80 = tpu.reciprocal %77 {approx = true} : vector<8x1xf32> -> vector<8x1xf32>
    %81 = vector.broadcast %80 : vector<8x1xf32> to vector<8x32xf32>
    %82 = arith.mulf %79, %81 : vector<8x32xf32>
    %83 = arith.addf %60, %82 : vector<8x32xf32>
    %84 = vector.extract_strided_slice %8 {offsets = [0, 3], sizes = [8, 1], strides = [1, 1]} : vector<8x4xf32> to vector<8x1xf32>
    %85 = vector.extract_strided_slice %6 {offsets = [3, 0], sizes = [1, 8], strides = [1, 1]} : vector<4x8xf32> to vector<1x8xf32>
    %86 = vector.broadcast %84 : vector<8x1xf32> to vector<8x8xf32>
    %87 = vector.broadcast %85 : vector<1x8xf32> to vector<8x8xf32>
    %88 = arith.addf %86, %87 : vector<8x8xf32>
    %cst_27 = arith.constant 2.000000e-01 : f32
    %89 = vector.broadcast %cst_27 : f32 to vector<8x8xf32>
    %90 = arith.mulf %89, %88 : vector<8x8xf32>
    %91 = arith.maximumf %88, %90 : vector<8x8xf32>
    %cst_28 = arith.constant -1.000000e+09 : f32
    %92 = vector.broadcast %cst_28 : f32 to vector<8x8xf32>
    %93 = arith.select %13, %91, %92 : vector<8x8xi1>, vector<8x8xf32>
    %cst_29 = arith.constant dense<0xFF800000> : vector<8xf32>
    %94 = vector.multi_reduction <maximumf>, %93, %cst_29 [1] : vector<8x8xf32> to vector<8xf32>
    %95 = vector.shape_cast %94 : vector<8xf32> to vector<8x1xf32>
    %96 = vector.broadcast %95 : vector<8x1xf32> to vector<8x8xf32>
    %97 = arith.subf %93, %96 : vector<8x8xf32>
    %98 = math.exp %97 : vector<8x8xf32>
    %cst_30 = arith.constant dense<0.000000e+00> : vector<8xf32>
    %99 = vector.multi_reduction <add>, %98, %cst_30 [1] : vector<8x8xf32> to vector<8xf32>
    %100 = vector.shape_cast %99 : vector<8xf32> to vector<8x1xf32>
    %101 = vector.extract_strided_slice %0 {offsets = [0, 96], sizes = [8, 32], strides = [1, 1]} : vector<8x128xf32> to vector<8x32xf32>
    %cst_31 = arith.constant dense<0.000000e+00> : vector<8x32xf32>
    %102 = tpu.matmul %98, %101, %cst_31 {dimension_numbers = #tpu.dot_dimension_numbers<[1], [0], [0], [1], [0, 0, 1, 1], [], []>} : vector<8x8xf32>, vector<8x32xf32>, vector<8x32xf32> -> vector<8x32xf32>
    %103 = tpu.reciprocal %100 {approx = true} : vector<8x1xf32> -> vector<8x1xf32>
    %104 = vector.broadcast %103 : vector<8x1xf32> to vector<8x32xf32>
    %105 = arith.mulf %102, %104 : vector<8x32xf32>
    %106 = arith.addf %83, %105 : vector<8x32xf32>
    %cst_32 = arith.constant 2.500000e-01 : f32
    %107 = vector.broadcast %cst_32 : f32 to vector<8x32xf32>
    %108 = arith.mulf %106, %107 : vector<8x32xf32>
    %c0_33 = arith.constant 0 : index
    %c0_34 = arith.constant 0 : index
    %109 = vector.load %arg4[%c0_33, %c0_34] : memref<1x32xf32, #tpu.memory_space<vmem>>, vector<1x32xf32>
    %110 = vector.broadcast %109 : vector<1x32xf32> to vector<8x32xf32>
    %111 = arith.addf %108, %110 : vector<8x32xf32>
    %c0_35 = arith.constant 0 : index
    %c0_36 = arith.constant 0 : index
    %112 = vector.load %arg7[%c0_35, %c0_36] : memref<8x32xf32, #tpu.memory_space<vmem>>, vector<8x32xf32>
    tpu.vector_store %arg7[%c0_35, %c0_36], %111 {strides = array<i32>} : memref<8x32xf32, #tpu.memory_space<vmem>>, vector<8x32xf32>,
    return
  }
  func.func @transform_0(%arg0: i32) -> (i32, i32) {
    %c0_i32 = arith.constant 0 : i32
    %c0_i32_0 = arith.constant 0 : i32
    %c0_i32_1 = arith.constant 0 : i32
    return %c0_i32, %c0_i32_0 : i32, i32
  }
  func.func @transform_1(%arg0: i32) -> (i32, i32) {
    %c0_i32 = arith.constant 0 : i32
    %c0_i32_0 = arith.constant 0 : i32
    %c0_i32_1 = arith.constant 0 : i32
    return %c0_i32, %c0_i32_0 : i32, i32
  }
  func.func @transform_2(%arg0: i32) -> (i32, i32) {
    %c0_i32 = arith.constant 0 : i32
    %c0_i32_0 = arith.constant 0 : i32
    %c0_i32_1 = arith.constant 0 : i32
    return %c0_i32, %c0_i32_0 : i32, i32
  }
  func.func @transform_3(%arg0: i32) -> (i32, i32) {
    %c0_i32 = arith.constant 0 : i32
    %c0_i32_0 = arith.constant 0 : i32
    %c0_i32_1 = arith.constant 0 : i32
    return %c0_i32, %c0_i32_0 : i32, i32
  }
  func.func @transform_4(%arg0: i32) -> (i32, i32) {
    %c0_i32 = arith.constant 0 : i32
    %c0_i32_0 = arith.constant 0 : i32
    return %arg0, %c0_i32 : i32, i32
  }
  func.func @transform_5(%arg0: i32) -> (i32, i32) {
    %c0_i32 = arith.constant 0 : i32
    %c0_i32_0 = arith.constant 0 : i32
    %c0_i32_1 = arith.constant 0 : i32
    return %c0_i32, %c0_i32_0 : i32, i32
  }
  func.func @transform_6(%arg0: i32) -> (i32, i32) {
    %c0_i32 = arith.constant 0 : i32
    %c0_i32_0 = arith.constant 0 : i32
    return %arg0, %c0_i32 : i32, i32
  }
}

</mosaic_0001>

<bundles_post_ra>
// kernel: tpu_custom_call.1
= control target key start
LH: loop header
LB: loop body
LE: loop exit
PB: predicated region body
PF: predicated region fallthrough
CT: control target
= control target key end

     0   :  { %11 = vsyncpa [#allocation3], 0  ;;  %s852_s0 = inlined_call_operand.vmem [shape: f32[8,128], index: 0, kind: input, shape index: {}]   ;;  %s853_s1 = inlined_call_operand.hbm [shape: f32[4,128], index: 1, kind: input, shape index: {}]   ;;  %s854_s2 = inlined_call_operand.vmem [shape: f32[4,128], index: 2, kind: input, shape index: {}]   ;;  %s855_s3 = inlined_call_operand.vmem [shape: f32[1,32], index: 3, kind: input, shape index: {}]   ;;  %s856_s4 = inlined_call_operand.vmem [shape: s32[8,1], index: 4, kind: input, shape index: {}]   ;;  %s857_s5 = inlined_call_operand.vmem [shape: s32[1,8], index: 5, kind: input, shape index: {}]   ;;  %s858_s6 = inlined_call_operand.hbm [shape: f32[8,32], index: 6, kind: output, shape index: {}]  }
   0x1   :  { %12 = vsyncpa [#allocation4], 0  ;;  %s743_s21 = smov [#allocation2]  }
   0x2   :  { %s21_s22 = sshll.u32 %s743_s21, 4  ;;  %s22_s22 = int_to_ptr.vmem [resolvable:$true] %s21_s22 }
   0x3   :  { %s707_s23 = scalar_lea.vmem %s22_s22, 64  ;;  %p712_p1 = scmp.lt.s32.totalorder %s22_s22, %s22_s22 }
   0x4   :  { %p708_p0 = scmp.ne.s32.totalorder %s22_s22, %s707_s23  ;;  %p713_p2 = scmp.lt.s32.totalorder %s707_s23, %s707_s23 }
   0x6   :  { %p714_p3 = por %p713_p2, %p712_p1 }
   0x8   :  { %p715_p4 = pnand %p714_p3, %p708_p0 }
   0xa   :  { %718 = shalt.err (!%p715_p4)
}
   0xb   :  { %24 = dma.hbm_to_vmem [thread:$0]  %s853_s1, 64, %s22_s22, [#allocation3]  }
   0xc   :  { %739 = dma.done.wait [#allocation3], 64  }
   0xd   :  { %740 = vsyncadd [#allocation3], 4294967232  ;;  %v744_v0 = vmov 0.0   ;;  %vm745_vm0 = vmmov 0   ;;  %v746_v1 = vmov 0   ;;  %v804_v3 = vld [vmem:[%s852_s0] sm:$0xff]  ;;  %v197_v13 = vlaneseq }
   0xe   :  { %641 = vmatprep.subr.mxu1 %v744_v0  ;;  %643 = vmatprep.mubr.msk.f32.mxu1 %vm745_vm0, %v744_v0  ;;  %v111_v2 = vld [vmem:[%s854_s2] sm:$0xf]  ;;  %v747_v6 = vmov 2   ;;  %v748_v11 = vmov 3   ;;  %v749_v12 = vmov 1   ;;  %s750_s0 = smov 96  }
   0xf   :  { %636 = vmatprep.subr.mxu0 %v744_v0  ;;  %638 = vmatprep.mubr.msk.f32.mxu0 %vm745_vm0, %v744_v0  ;;  %v40_v4 = vld [vmem:[#allocation2] sm:$0xf]  ;;  %v198_v14 = vshrl.u32 %v197_v13, 7  ;;  %vm205_vm1 = vcmask 64512   ;;  %s752_s7 = smov 64   ;;  %s753_s10 = smov [#allocation5]  }
  0x10   :  { %679 = vset.pattern.permute.xlu1 %v746_v1  ;;  %677 = vset.pattern.permute.xlu0 %v746_v1  ;;  %v182_v5 = vld [vmem:[%s856_s4] sm:$0xff]  ;;  %s609_s11 = sshll.u32 %s753_s10, 4  ;;  %vm601_vm3 = vcmask 261120   ;;  %s610_s11 = int_to_ptr.vmem [resolvable:$true] %s609_s11 }
  0x11   :  { %642 = vmatpush3.xpose.msra.mxu1 %v111_v2  ;;  %637 = vmatpush3.xpose.msra.mxu0 %v804_v3  ;;  %v398_v15 = vsub.s32 2, %v198_v14  ;;  %v199_v16 = vsub.s32 0, %v198_v14  ;;  %v498_v22 = vsub.s32 3, %v198_v14  ;;  %v297_v23 = vsub.s32 1, %v198_v14  ;;  %v618_v26 = vld [vmem:[%s857_s5] ss:$0 sm:$0xff]  ;;  %p724_p6 = scmp.lt.s32.totalorder %s610_s11, %s610_s11 }
  0x12   :  { %185 = vperm.xlu1 %679, %v182_v5   ;;  %651 = vmatprep.subr.mxu1 %v744_v0  ;;  %s751_s5 = smov 32   ;;  %s719_s12 = scalar_lea.vmem %s610_s11, 128 }
  0x13   :  { %646 = vmatprep.subr.mxu0 %v744_v0  ;;  %p720_p5 = scmp.ne.s32.totalorder %s610_s11, %s719_s12  ;;  %p725_p7 = scmp.lt.s32.totalorder %s719_s12, %s719_s12 }
  0x14   :  { %644 = vmatmul.mubr.f32.vlgmr.msra.gmra.mxu1 %v804_v3  ;;  %639 = vmatmul.mubr.f32.vlgmr.msra.gmra.mxu0 %v40_v4 }
  0x15   :  { %647 = vmatpush3.msra.mxu0 %v804_v3  ;;  %648 = vmatprep.mubr.msk.f32.mxu0 %vm745_vm0, %v744_v0  ;;  %p726_p8 = por %p725_p7, %p724_p6 }
  0x16   :  { %680 = vset.pattern.permute.xlu1 %v747_v6  ;;  %656 = vmatprep.subr.mxu0 %v744_v0 }
  0x17   :  { %653 = vmatprep.mubr.msk.f32.mxu1 %vm745_vm0, %v744_v0  ;;  %p727_p9 = pnand %p726_p8, %p720_p5 }
  0x8d   :  { %v186_v17 = vpop.permute.xlu1 %185 }
  0x8e   :  { %vm191_vm2 = vcmp.eq.s32.totalorder %v186_v17, %v618_v26 }
  0xd4   :  { %v178_v7 = vpop.f32.mrf.mxu1  ;;  %v107_v8 = vpop.f32.mrf.mxu0 }
  0xd5   :  { %393 = vperm.xlu1 %680, %v178_v7   ;;  %194 = vperm.xlu0 %677, %v178_v7   ;;  %v399_v18 = vrot.slane %v107_v8, %v398_v15  ;;  %v200_v19 = vrot.slane %v107_v8, %v199_v16  ;;  %v499_v29 = vrot.slane %v107_v8, %v498_v22 }
  0xd6   :  { %v645_v9 = vpop.f32.mrf.mxu1  ;;  %v640_v10 = vpop.f32.mrf.mxu0  ;;  %v298_v30 = vrot.slane %v107_v8, %v297_v23 }
  0xd9   :  { %681 = vset.pattern.permute.xlu1 %v748_v11  ;;  %678 = vset.pattern.permute.xlu0 %v749_v12 }
  0xda   :  { %493 = vperm.xlu1 %681, %v178_v7   ;;  %292 = vperm.xlu0 %678, %v178_v7  }
  0xde   :  { %313 = vrot.lane.b32.xlu1 %v804_v3, %s750_s0  ;;  %682 = vset.pattern.permute.xlu0 %v748_v11 }
 0x150   :  { %v394_v20 = vpop.permute.xlu1 %393  ;;  %v195_v21 = vpop.permute.xlu0 %194 }
 0x151   :  { %v400_v24 = vadd.f32 %v399_v18, %v394_v20  ;;  %v201_v25 = vadd.f32 %v200_v19, %v195_v21 }
 0x153   :  { %v401_v27 = vmul.f32 0.2, %v400_v24  ;;  %v202_v28 = vmul.f32 0.2, %v201_v25 }
 0x155   :  { %v402_v31 = vmax.f32 %v400_v24, %v401_v27  ;;  %v203_v32 = vmax.f32 %v201_v25, %v202_v28  ;;  %v494_v33 = vpop.permute.xlu1 %493  ;;  %v293_v34 = vpop.permute.xlu0 %292 }
 0x156   :  { %v500_v35 = vadd.f32 %v499_v29, %v494_v33  ;;  %v299_v36 = vadd.f32 %v298_v30, %v293_v34 }
 0x157   :  { %v204_v37 = vsel %vm191_vm2, %v203_v32, -1e+09  ;;  %v403_v41 = vsel %vm191_vm2, %v402_v31, -1e+09  ;;  %v623_v31 = vld [vmem:[%s855_s3] ss:$0 sm:$0xff] }
 0x158   :  { %v501_v38 = vmul.f32 0.2, %v500_v35  ;;  %v300_v39 = vmul.f32 0.2, %v299_v36  ;;  %v206_v40 = vsel %vm205_vm1, %v204_v37, -inf  ;;  %v404_v45 = vsel %vm205_vm1, %v403_v41, -inf }
 0x159   :  { %207 = vmax.xlane.f32.xlu0 %v206_v40  ;;  %v314_v42 = vpop.permute.xlu1 %313 }
 0x15a   :  { %v502_v43 = vmax.f32 %v500_v35, %v501_v38  ;;  %v301_v44 = vmax.f32 %v299_v36, %v300_v39  ;;  %652 = vmatpush3.msra.mxu1 %v314_v42 }
 0x15b   :  { %661 = vmatprep.subr.mxu1 %v744_v0 }
 0x15c   :  { %v302_v46 = vsel %vm191_vm2, %v301_v44, -1e+09  ;;  %v503_v48 = vsel %vm191_vm2, %v502_v43, -1e+09 }
 0x15d   :  { %405 = vmax.xlane.f32.xlu0 %v404_v45  ;;  %v303_v47 = vsel %vm205_vm1, %v302_v46, -inf  ;;  %v504_v49 = vsel %vm205_vm1, %v503_v48, -inf }
 0x15e   :  { %304 = vmax.xlane.f32.xlu1 %v303_v47 }
 0x161   :  { %505 = vmax.xlane.f32.xlu0 %v504_v49 }
 0x16f   :  { %513 = vrot.lane.b32.xlu1 %v804_v3, %s751_s5 }
 0x177   :  { %413 = vrot.lane.b32.xlu0 %v804_v3, %s752_s7 }
 0x1e2   :  { %v208_v50 = vpop.xlane.xlu0 %207 }
 0x1e3   :  { %v209_v51 = vsub.f32 %v204_v37, %v208_v50 }
 0x1e5   :  { %v210_v52 = vmul.f32 1.442695, %v209_v51 }
 0x1e6   :  { %v406_v53 = vpop.xlane.xlu0 %405 }
 0x1e7   :  { %683 = vpow2.f32 %v210_v52  ;;  %v407_v54 = vsub.f32 %v403_v41, %v406_v53  ;;  %v305_v55 = vpop.xlane.xlu1 %304 }
 0x1e8   :  { %v306_v56 = vsub.f32 %v302_v46, %v305_v55 }
 0x1e9   :  { %v408_v57 = vmul.f32 1.442695, %v407_v54 }
 0x1ea   :  { %v307_v58 = vmul.f32 1.442695, %v306_v56  ;;  %v506_v59 = vpop.xlane.xlu0 %505 }
 0x1eb   :  { %685 = vpow2.f32 %v408_v57  ;;  %v507_v60 = vsub.f32 %v503_v48, %v506_v59  ;;  %v514_v3 = vpop.permute.xlu1 %513 }
 0x1ec   :  { %687 = vpow2.f32 %v307_v58 }
 0x1ed   :  { %v508_v61 = vmul.f32 1.442695, %v507_v60 }
 0x1ee   :  { %v414_v62 = vpop.permute.xlu0 %413 }
 0x1ef   :  { %689 = vpow2.f32 %v508_v61 }
 0x1f4   :  { %v684_v63 = vpop.eup %683 }
 0x1f5   :  { %649 = vmatmul.mubr.msk.f32.vlgmr.msra.gmra.mxu0 %vm205_vm1, %v684_v63  ;;  %v212_v1 = vsel %vm205_vm1, %v684_v63, 0.0 }
 0x1f6   :  { %213 = vadd.xlane.f32.xlu1 %v212_v1  ;;  %657 = vmatpush3.msra.mxu0 %v414_v62 }
 0x1f7   :  { %658 = vmatprep.mubr.msk.f32.mxu0 %vm745_vm0, %v744_v0 }
 0x1f8   :  { %v686_v2 = vpop.eup %685 }
 0x1f9   :  { %v688_v4 = vpop.eup %687  ;;  %659 = vmatmul.mubr.msk.f32.vlgmr.msra.gmra.mxu0 %vm205_vm1, %v686_v2  ;;  %v410_v8 = vsel %vm205_vm1, %v686_v2, 0.0 }
 0x1fa   :  { %654 = vmatmul.mubr.msk.f32.vlgmr.msra.gmra.mxu1 %vm205_vm1, %v688_v4  ;;  %v309_v5 = vsel %vm205_vm1, %v688_v4, 0.0 }
 0x1fb   :  { %662 = vmatpush3.msra.mxu1 %v514_v3  ;;  %310 = vadd.xlane.f32.xlu0 %v309_v5 }
 0x1fc   :  { %v690_v6 = vpop.eup %689  ;;  %663 = vmatprep.mubr.msk.f32.mxu1 %vm745_vm0, %v744_v0 }
 0x1fd   :  { %v510_v7 = vsel %vm205_vm1, %v690_v6, 0.0 }
 0x1fe   :  { %664 = vmatmul.mubr.msk.f32.vlgmr.msra.gmra.mxu1 %vm205_vm1, %v690_v6  ;;  %511 = vadd.xlane.f32.xlu1 %v510_v7 }
 0x1ff   :  { %411 = vadd.xlane.f32.xlu0 %v410_v8 }
 0x27f   :  { %v214_v10 = vpop.xlane.xlu1 %213 }
 0x280   :  { %691 = vrcp.f32 %v214_v10 }
 0x284   :  { %v311_v9 = vpop.xlane.xlu0 %310 }
 0x285   :  { %693 = vrcp.f32 %v311_v9 }
 0x287   :  { %v512_v12 = vpop.xlane.xlu1 %511 }
 0x288   :  { %v412_v11 = vpop.xlane.xlu0 %411 }
 0x289   :  { %695 = vrcp.f32 %v412_v11 }
 0x28a   :  { %697 = vrcp.f32 %v512_v12 }
 0x28d   :  { %v692_v15 = vpop.eup %691 }
 0x292   :  { %v694_v16 = vpop.eup %693 }
 0x296   :  { %v696_v21 = vpop.eup %695 }
 0x297   :  { %v698_v25 = vpop.eup %697 }
 0x2b5   :  { %v284_v13 = vpop.f32.mrf.mxu0 }
 0x2b6   :  { %v289_v18 = vmul.f32 %v692_v15, %v284_v13 }
 0x2b7   :  { %v650_v14 = vpop.f32.mrf.mxu0 }
 0x2b9   :  { %v485_v0 = vpop.f32.mrf.mxu0 }
 0x2ba   :  { %v385_v17 = vpop.f32.mrf.mxu1  ;;  %v490_v23 = vmul.f32 %v696_v21, %v485_v0 }
 0x2bb   :  { %v390_v19 = vmul.f32 %v694_v16, %v385_v17  ;;  %v660_v20 = vpop.f32.mrf.mxu0 }
 0x2bc   :  { %v655_v22 = vpop.f32.mrf.mxu1 }
 0x2bd   :  { %v391_v24 = vadd.f32 %v390_v19, %v289_v18 }
 0x2be   :  { %v585_v26 = vpop.f32.mrf.mxu1 }
 0x2bf   :  { %v491_v27 = vadd.f32 %v490_v23, %v391_v24  ;;  %v590_v28 = vmul.f32 %v698_v25, %v585_v26 }
 0x2c0   :  { %v665_v29 = vpop.f32.mrf.mxu1 }
 0x2c1   :  { %v591_v30 = vadd.f32 %v590_v28, %v491_v27 }
 0x2c3   :  { %v592_v32 = vmul.f32 0.25, %v591_v30 }
 0x2c5   :  { %v600_v33 = vadd.f32 %v623_v31, %v592_v32 }
 0x2c7   :  { %602 = vst.msk [vmem:[#allocation5] sm:$0xff] %vm601_vm3, %v600_v33 }
 0x2c8   :  { %730 = shalt.err (!%p727_p9)
}
 0x2c9   :  { %612 = dma.vmem_to_hbm [thread:$0]  %s610_s11, 128, %s858_s6, [#allocation4]  }
 0x2ca   :  { %741 = dma.done.wait [#allocation4], 128  }
 0x2cb   :  { %742 = vsyncadd [#allocation4], 4294967168 }
 0x2cc   :  { %616 = vsyncpa [#allocation3], 1 }
 0x2cd   :  { %617 = vsyncpa [#allocation4], 1 }

</bundles_post_ra>
